<compile_context>
chip_gen: v7x
topology: tpu7x:2x2x1
jax: 0.10.0
libtpu: 0.0.40
codegen_flags: <defaults>
</compile_context>

<pallas_src>
import jax
import jax.numpy as jnp
from jax import lax
from jax.experimental import pallas as pl
from jax.experimental.pallas import tpu as pltpu


def highway_kernel(x_ref, w_ref, b_ref, o_ref):
    """Fused Highway forward for one batch tile.

    x_ref : (bm, S)     input activation tile (f32)
    w_ref : (L, S, 3S)  fused weights, [gate | nonlinear | linear] on last dim (bf16)
    b_ref : (L, 1, 3S)  fused biases (f32)
    o_ref : (bm, S)     output tile
    """
    S = o_ref.shape[1]
    L = w_ref.shape[0]

    h0 = x_ref[...].astype(jnp.float32)

    def layer_body(l, h):
        w = w_ref[l]                                   # (S, 3S) bf16 tile
        b = b_ref[l]                                   # (1, 3S) f32
        # One fused MXU matmul per layer, f32 accumulation.
        z = jnp.dot(h.astype(w.dtype), w,
                    preferred_element_type=jnp.float32) + b    # (bm, 3S)
        zg = z[:, :S]
        nonlinear = jnp.maximum(z[:, S:2 * S], 0.0)    # f = ReLU
        linear = z[:, 2 * S:]
        # sigmoid via EUP exp + approx reciprocal (free EUP slot).
        gate = pl.reciprocal(1.0 + jnp.exp(-zg), approx=True)
        # h = gate*nonlinear + (1-gate)*linear, one fewer VPU op:
        return linear + gate * (nonlinear - linear)

    h = lax.fori_loop(0, L, layer_body, h0, unroll=True)
    o_ref[...] = h.astype(o_ref.dtype)


def pack_highway_params(wn, bn, wl, bl, wg, bg, weight_dtype=jnp.bfloat16):
    """One-time packing of PyTorch-convention parameters.

    wn/wl/wg: (L, S, S) in (out, in) convention.  bn/bl/bg: (L, S).
    Returns:
      w_packed: (L, S, 3S)  = concat([Wg.T, Wn.T, Wl.T], axis=-1), cast to bf16
      b_packed: (L, 1, 3S)  = concat([bg, bn, bl], axis=-1), f32
    Call this once (outside the per-step forward) so the transpose/concat/cast
    are not paid on every call.
    """
    L, S, _ = wn.shape
    w_packed = jnp.concatenate(
        [jnp.transpose(wg, (0, 2, 1)),
         jnp.transpose(wn, (0, 2, 1)),
         jnp.transpose(wl, (0, 2, 1))], axis=-1).astype(weight_dtype)
    b_packed = jnp.concatenate([bg, bn, bl], axis=-1).reshape(
        L, 1, 3 * S).astype(jnp.float32)
    return w_packed, b_packed


def highway_forward(x, w_packed, b_packed, *, bm=None):
    """x: (B, S).  w_packed: (L, S, 3S).  b_packed: (L, 1, 3S)."""
    B, S = x.shape

    # Sublane-aligned batch tile; large enough to amortize the ~0.35us/step grid
    # overhead, small enough that (bm x 3S) intermediates stay comfortably in
    # vregs/VMEM.
    if bm is None:
        bm = min(max(B, 8), 512)
    bm = max(8, (bm // 8) * 8)

    B_pad = ((B + bm - 1) // bm) * bm
    x_in = jnp.pad(x, ((0, B_pad - B), (0, 0))) if B_pad != B else x

    out = pl.pallas_call(
        highway_kernel,
        out_shape=jax.ShapeDtypeStruct((B_pad, S), x.dtype),
        grid_spec=pltpu.PrefetchScalarGridSpec(
            num_scalar_prefetch=0,
            grid=(B_pad // bm,),
            in_specs=[
                pl.BlockSpec((bm, S), lambda i: (i, 0)),
                # Constant block index -> weights/biases resident across tiles.
                pl.BlockSpec(w_packed.shape, lambda i: (0, 0, 0)),
                pl.BlockSpec(b_packed.shape, lambda i: (0, 0, 0)),
            ],
            out_specs=pl.BlockSpec((bm, S), lambda i: (i, 0)),
        ),
        compiler_params=pltpu.CompilerParams(
            dimension_semantics=("parallel",)),
    )(x_in, w_packed, b_packed)

    return out[:B] if B_pad != B else out


def highway_ref(x, wn, bn, wl, bl, wg, bg):
    """Pure-JAX (f32) reference mirroring the PyTorch forward."""
    L = wn.shape[0]
    for l in range(L):
        gate = jax.nn.sigmoid(x @ wg[l].T + bg[l])
        nonlinear = jnp.maximum(x @ wn[l].T + bn[l], 0.0)
        linear = x @ wl[l].T + bl[l]
        x = gate * nonlinear + (1.0 - gate) * linear
    return x


if __name__ == "__main__":
    B, S, L = 8, 128, 3   # batch, hidden size, num highway layers

    key = jax.random.PRNGKey(0)
    ks = jax.random.split(key, 7)
    scale = 1.0 / jnp.sqrt(S)
    x = jax.random.normal(ks[0], (B, S), dtype=jnp.float32)
    wn = jax.random.uniform(ks[1], (L, S, S), jnp.float32, -scale, scale)
    bn = jax.random.uniform(ks[2], (L, S), jnp.float32, -scale, scale)
    wl = jax.random.uniform(ks[3], (L, S, S), jnp.float32, -scale, scale)
    bl = jax.random.uniform(ks[4], (L, S), jnp.float32, -scale, scale)
    wg = jax.random.uniform(ks[5], (L, S, S), jnp.float32, -scale, scale)
    bg = jax.random.uniform(ks[6], (L, S), jnp.float32, -scale, scale)

    # Pack parameters once (transpose + concat + bf16 cast hoisted out of forward).
    w_packed, b_packed = jax.block_until_ready(
        pack_highway_params(wn, bn, wl, bl, wg, bg))

    out = highway_forward(x, w_packed, b_packed)
    jax.block_until_ready(out)

    ref = highway_ref(x, wn, bn, wl, bl, wg, bg)
    if not bool(jnp.allclose(out, ref, rtol=2e-2, atol=2e-2)):
        err = float(jnp.max(jnp.abs(out - ref)))
        raise AssertionError(
            f"Pallas output does not match reference (max abs err={err})")

    print("KERNEL_OK")
</pallas_src>

<mosaic_0001>
module attributes {stable_mosaic.version = 11 : i64} {
  func.func @highway_kernel(%arg0: i32, %arg1: memref<8x128xf32, #tpu.memory_space<vmem>>, %arg2: memref<3x128x384xbf16, #tpu.memory_space<vmem>>, %arg3: memref<3x1x384xf32, #tpu.memory_space<vmem>>, %arg4: memref<8x128xf32, #tpu.memory_space<vmem>>) attributes {dimension_semantics = [#tpu.dimension_semantics<parallel>], iteration_bounds = array<i64: 1>, scalar_prefetch = 0 : i64, scratch_operands = 0 : i64, tpu.core_type = #tpu.core_type<tc>, window_params = [{transform_indices = @transform_0, window_bounds = array<i64: 8, 128>}, {pipeline_mode = #tpu.pipeline_mode<synchronous>, transform_indices = @transform_1, window_bounds = array<i64: 3, 128, 384>}, {pipeline_mode = #tpu.pipeline_mode<synchronous>, transform_indices = @transform_2, window_bounds = array<i64: 3, 1, 384>}, {transform_indices = @transform_3, window_bounds = array<i64: 8, 128>}]} {
    %c0 = arith.constant 0 : index
    %c0_0 = arith.constant 0 : index
    %0 = vector.load %arg1[%c0, %c0_0] : memref<8x128xf32, #tpu.memory_space<vmem>>, vector<8x128xf32>
    %c0_i32 = arith.constant 0 : i32
    %1 = arith.index_cast %c0_i32 : i32 to index
    %c0_1 = arith.constant 0 : index
    %c0_2 = arith.constant 0 : index
    %2 = vector.load %arg2[%1, %c0_1, %c0_2] : memref<3x128x384xbf16, #tpu.memory_space<vmem>>, vector<1x128x384xbf16>
    %3 = vector.shape_cast %2 : vector<1x128x384xbf16> to vector<128x384xbf16>
    %4 = arith.index_cast %c0_i32 : i32 to index
    %c0_3 = arith.constant 0 : index
    %c0_4 = arith.constant 0 : index
    %5 = vector.load %arg3[%4, %c0_3, %c0_4] : memref<3x1x384xf32, #tpu.memory_space<vmem>>, vector<1x1x384xf32>
    %6 = vector.shape_cast %5 : vector<1x1x384xf32> to vector<1x384xf32>
    %7 = arith.truncf %0 : vector<8x128xf32> to vector<8x128xbf16>
    %cst = arith.constant dense<0.000000e+00> : vector<8x384xf32>
    %8 = tpu.matmul %7, %3, %cst {dimension_numbers = #tpu.dot_dimension_numbers<[1], [0], [0], [1], [0, 0, 1, 1], [], []>} : vector<8x128xbf16>, vector<128x384xbf16>, vector<8x384xf32> -> vector<8x384xf32>
    %9 = vector.broadcast %6 : vector<1x384xf32> to vector<8x384xf32>
    %10 = arith.addf %8, %9 : vector<8x384xf32>
    %11 = vector.extract_strided_slice %10 {offsets = [0, 0], sizes = [8, 128], strides = [1, 1]} : vector<8x384xf32> to vector<8x128xf32>
    %12 = vector.extract_strided_slice %10 {offsets = [0, 128], sizes = [8, 128], strides = [1, 1]} : vector<8x384xf32> to vector<8x128xf32>
    %cst_5 = arith.constant 0.000000e+00 : f32
    %13 = vector.broadcast %cst_5 : f32 to vector<8x128xf32>
    %14 = arith.maximumf %12, %13 : vector<8x128xf32>
    %15 = vector.extract_strided_slice %10 {offsets = [0, 256], sizes = [8, 128], strides = [1, 1]} : vector<8x384xf32> to vector<8x128xf32>
    %cst_6 = arith.constant 0.000000e+00 : f32
    %16 = vector.broadcast %cst_6 : f32 to vector<8x128xf32>
    %17 = arith.subf %16, %11 : vector<8x128xf32>
    %18 = math.exp %17 : vector<8x128xf32>
    %cst_7 = arith.constant 1.000000e+00 : f32
    %19 = vector.broadcast %cst_7 : f32 to vector<8x128xf32>
    %20 = arith.addf %19, %18 : vector<8x128xf32>
    %21 = tpu.reciprocal %20 {approx = true} : vector<8x128xf32> -> vector<8x128xf32>
    %22 = arith.subf %14, %15 : vector<8x128xf32>
    %23 = arith.mulf %21, %22 : vector<8x128xf32>
    %24 = arith.addf %15, %23 : vector<8x128xf32>
    %c1_i32 = arith.constant 1 : i32
    %25 = arith.index_cast %c1_i32 : i32 to index
    %c0_8 = arith.constant 0 : index
    %c0_9 = arith.constant 0 : index
    %26 = vector.load %arg2[%25, %c0_8, %c0_9] : memref<3x128x384xbf16, #tpu.memory_space<vmem>>, vector<1x128x384xbf16>
    %27 = vector.shape_cast %26 : vector<1x128x384xbf16> to vector<128x384xbf16>
    %28 = arith.index_cast %c1_i32 : i32 to index
    %c0_10 = arith.constant 0 : index
    %c0_11 = arith.constant 0 : index
    %29 = vector.load %arg3[%28, %c0_10, %c0_11] : memref<3x1x384xf32, #tpu.memory_space<vmem>>, vector<1x1x384xf32>
    %30 = vector.shape_cast %29 : vector<1x1x384xf32> to vector<1x384xf32>
    %31 = arith.truncf %24 : vector<8x128xf32> to vector<8x128xbf16>
    %cst_12 = arith.constant dense<0.000000e+00> : vector<8x384xf32>
    %32 = tpu.matmul %31, %27, %cst_12 {dimension_numbers = #tpu.dot_dimension_numbers<[1], [0], [0], [1], [0, 0, 1, 1], [], []>} : vector<8x128xbf16>, vector<128x384xbf16>, vector<8x384xf32> -> vector<8x384xf32>
    %33 = vector.broadcast %30 : vector<1x384xf32> to vector<8x384xf32>
    %34 = arith.addf %32, %33 : vector<8x384xf32>
    %35 = vector.extract_strided_slice %34 {offsets = [0, 0], sizes = [8, 128], strides = [1, 1]} : vector<8x384xf32> to vector<8x128xf32>
    %36 = vector.extract_strided_slice %34 {offsets = [0, 128], sizes = [8, 128], strides = [1, 1]} : vector<8x384xf32> to vector<8x128xf32>
    %cst_13 = arith.constant 0.000000e+00 : f32
    %37 = vector.broadcast %cst_13 : f32 to vector<8x128xf32>
    %38 = arith.maximumf %36, %37 : vector<8x128xf32>
    %39 = vector.extract_strided_slice %34 {offsets = [0, 256], sizes = [8, 128], strides = [1, 1]} : vector<8x384xf32> to vector<8x128xf32>
    %cst_14 = arith.constant 0.000000e+00 : f32
    %40 = vector.broadcast %cst_14 : f32 to vector<8x128xf32>
    %41 = arith.subf %40, %35 : vector<8x128xf32>
    %42 = math.exp %41 : vector<8x128xf32>
    %cst_15 = arith.constant 1.000000e+00 : f32
    %43 = vector.broadcast %cst_15 : f32 to vector<8x128xf32>
    %44 = arith.addf %43, %42 : vector<8x128xf32>
    %45 = tpu.reciprocal %44 {approx = true} : vector<8x128xf32> -> vector<8x128xf32>
    %46 = arith.subf %38, %39 : vector<8x128xf32>
    %47 = arith.mulf %45, %46 : vector<8x128xf32>
    %48 = arith.addf %39, %47 : vector<8x128xf32>
    %c2_i32 = arith.constant 2 : i32
    %49 = arith.index_cast %c2_i32 : i32 to index
    %c0_16 = arith.constant 0 : index
    %c0_17 = arith.constant 0 : index
    %50 = vector.load %arg2[%49, %c0_16, %c0_17] : memref<3x128x384xbf16, #tpu.memory_space<vmem>>, vector<1x128x384xbf16>
    %51 = vector.shape_cast %50 : vector<1x128x384xbf16> to vector<128x384xbf16>
    %52 = arith.index_cast %c2_i32 : i32 to index
    %c0_18 = arith.constant 0 : index
    %c0_19 = arith.constant 0 : index
    %53 = vector.load %arg3[%52, %c0_18, %c0_19] : memref<3x1x384xf32, #tpu.memory_space<vmem>>, vector<1x1x384xf32>
    %54 = vector.shape_cast %53 : vector<1x1x384xf32> to vector<1x384xf32>
    %55 = arith.truncf %48 : vector<8x128xf32> to vector<8x128xbf16>
    %cst_20 = arith.constant dense<0.000000e+00> : vector<8x384xf32>
    %56 = tpu.matmul %55, %51, %cst_20 {dimension_numbers = #tpu.dot_dimension_numbers<[1], [0], [0], [1], [0, 0, 1, 1], [], []>} : vector<8x128xbf16>, vector<128x384xbf16>, vector<8x384xf32> -> vector<8x384xf32>
    %57 = vector.broadcast %54 : vector<1x384xf32> to vector<8x384xf32>
    %58 = arith.addf %56, %57 : vector<8x384xf32>
    %59 = vector.extract_strided_slice %58 {offsets = [0, 0], sizes = [8, 128], strides = [1, 1]} : vector<8x384xf32> to vector<8x128xf32>
    %60 = vector.extract_strided_slice %58 {offsets = [0, 128], sizes = [8, 128], strides = [1, 1]} : vector<8x384xf32> to vector<8x128xf32>
    %cst_21 = arith.constant 0.000000e+00 : f32
    %61 = vector.broadcast %cst_21 : f32 to vector<8x128xf32>
    %62 = arith.maximumf %60, %61 : vector<8x128xf32>
    %63 = vector.extract_strided_slice %58 {offsets = [0, 256], sizes = [8, 128], strides = [1, 1]} : vector<8x384xf32> to vector<8x128xf32>
    %cst_22 = arith.constant 0.000000e+00 : f32
    %64 = vector.broadcast %cst_22 : f32 to vector<8x128xf32>
    %65 = arith.subf %64, %59 : vector<8x128xf32>
    %66 = math.exp %65 : vector<8x128xf32>
    %cst_23 = arith.constant 1.000000e+00 : f32
    %67 = vector.broadcast %cst_23 : f32 to vector<8x128xf32>
    %68 = arith.addf %67, %66 : vector<8x128xf32>
    %69 = tpu.reciprocal %68 {approx = true} : vector<8x128xf32> -> vector<8x128xf32>
    %70 = arith.subf %62, %63 : vector<8x128xf32>
    %71 = arith.mulf %69, %70 : vector<8x128xf32>
    %72 = arith.addf %63, %71 : vector<8x128xf32>
    %c3_i32 = arith.constant 3 : i32
    %c0_24 = arith.constant 0 : index
    %c0_25 = arith.constant 0 : index
    %73 = vector.load %arg4[%c0_24, %c0_25] : memref<8x128xf32, #tpu.memory_space<vmem>>, vector<8x128xf32>
    tpu.vector_store %arg4[%c0_24, %c0_25], %72 {strides = array<i32>} : memref<8x128xf32, #tpu.memory_space<vmem>>, vector<8x128xf32>,
    return
  }
  func.func @transform_0(%arg0: i32) -> (i32, i32) {
    %c0_i32 = arith.constant 0 : i32
    %c0_i32_0 = arith.constant 0 : i32
    return %arg0, %c0_i32 : i32, i32
  }
  func.func @transform_1(%arg0: i32) -> (i32, i32, i32) {
    %c0_i32 = arith.constant 0 : i32
    %c0_i32_0 = arith.constant 0 : i32
    %c0_i32_1 = arith.constant 0 : i32
    %c0_i32_2 = arith.constant 0 : i32
    return %c0_i32, %c0_i32_0, %c0_i32_1 : i32, i32, i32
  }
  func.func @transform_2(%arg0: i32) -> (i32, i32, i32) {
    %c0_i32 = arith.constant 0 : i32
    %c0_i32_0 = arith.constant 0 : i32
    %c0_i32_1 = arith.constant 0 : i32
    %c0_i32_2 = arith.constant 0 : i32
    return %c0_i32, %c0_i32_0, %c0_i32_1 : i32, i32, i32
  }
  func.func @transform_3(%arg0: i32) -> (i32, i32) {
    %c0_i32 = arith.constant 0 : i32
    %c0_i32_0 = arith.constant 0 : i32
    return %arg0, %c0_i32 : i32, i32
  }
}

</mosaic_0001>

<bundles_post_ra>
// kernel: tpu_custom_call.1
= control target key start
LH: loop header
LB: loop body
LE: loop exit
PB: predicated region body
PF: predicated region fallthrough
CT: control target
= control target key end

     0   :  { %8 = vsyncpa [#allocation3], 0  ;;  %s1380_s0 = inlined_call_operand.hbm [shape: f32[8,128], index: 0, kind: input, shape index: {}]   ;;  %s1381_s1 = inlined_call_operand.hbm [shape: bf16[3,128,384], index: 1, kind: input, shape index: {}]   ;;  %s1382_s2 = inlined_call_operand.hbm [shape: f32[3,1,384], index: 2, kind: input, shape index: {}]   ;;  %s1383_s3 = inlined_call_operand.hbm [shape: f32[8,128], index: 3, kind: output, shape index: {}]  }
   0x1   :  { %9 = vsyncpa [#allocation6], 0 }
   0x2   :  { %10 = vsyncpa [#allocation4], 0  ;;  %s1253_s12 = smov [#allocation5]   ;;  %s1159_s16 = scalar_lea.hbm %s1381_s1, 9216 }
   0x3   :  { %s26_s13 = sshll.u32 %s1253_s12, 4  ;;  %p1160_p0 = scmp.ne.s32.totalorder %s1381_s1, %s1159_s16  ;;  %s27_s13 = int_to_ptr.vmem [resolvable:$true] %s26_s13 }
   0x4   :  { %p1163_p1 = scmp.lt.u32.totalorder %s1159_s16, %s1381_s1 }
   0x6   :  { %p1165_p2 = pnand %p1163_p1, %p1160_p0 }
   0x8   :  { %1168 = shalt.err (!%p1165_p2)
}
   0x9   :  { %s1169_s21 = scalar_lea.vmem %s27_s13, 9216  ;;  %p1174_p4 = scmp.lt.s32.totalorder %s27_s13, %s27_s13 }
   0xa   :  { %p1170_p3 = scmp.ne.s32.totalorder %s27_s13, %s1169_s21  ;;  %p1175_p5 = scmp.lt.s32.totalorder %s1169_s21, %s1169_s21 }
   0xc   :  { %p1176_p6 = por %p1175_p5, %p1174_p4 }
   0xe   :  { %p1177_p7 = pnand %p1176_p6, %p1170_p3 }
  0x10   :  { %1180 = shalt.err (!%p1177_p7)
}
  0x11   :  { %s1254_s22 = smov 192   ;;  %s1255_s23 = smov 12  }
  0x12   :  { %32 = dma.hbm_to_vmem [thread:$0]  %s1381_s1, 9216, %s27_s13, [#allocation6], %s1254_s22, %s1254_s22, %s1255_s23  }
  0x13   :  { %s1256_s26 = smov [#allocation2]   ;;  %s1257_s28 = smov [#allocation7]  }
  0x14   :  { %s17_s27 = sshll.u32 %s1256_s26, 4  ;;  %s38_s29 = sshll.u32 %s1257_s28, 4  ;;  %s18_s27 = int_to_ptr.vmem [resolvable:$true] %s17_s27  ;;  %s39_s29 = int_to_ptr.vmem [resolvable:$true] %s38_s29 }
  0x15   :  { %s1181_s5 = scalar_lea.hbm %s1380_s0, 128 }
  0x16   :  { %p1182_p8 = scmp.ne.s32.totalorder %s1380_s0, %s1181_s5  ;;  %p1185_p9 = scmp.lt.u32.totalorder %s1181_s5, %s1380_s0 }
  0x18   :  { %p1187_p10 = pnand %p1185_p9, %p1182_p8 }
  0x1a   :  { %1190 = shalt.err (!%p1187_p10)
}
  0x1b   :  { %s1191_s1 = scalar_lea.vmem %s18_s27, 128  ;;  %p1196_p12 = scmp.lt.s32.totalorder %s18_s27, %s18_s27 }
  0x1c   :  { %p1192_p11 = scmp.ne.s32.totalorder %s18_s27, %s1191_s1  ;;  %p1197_p13 = scmp.lt.s32.totalorder %s1191_s1, %s1191_s1 }
  0x1e   :  { %p1198_p0 = por %p1197_p13, %p1196_p12 }
  0x20   :  { %p1199_p1 = pnand %p1198_p0, %p1192_p11 }
  0x22   :  { %1202 = shalt.err (!%p1199_p1)
}
  0x23   :  { %20 = dma.hbm_to_vmem [thread:$0]  %s1380_s0, 128, %s18_s27, [#allocation3]  }
  0x24   :  { %s1203_s14 = scalar_lea.hbm %s1382_s2, 144 }
  0x25   :  { %p1204_p2 = scmp.ne.s32.totalorder %s1382_s2, %s1203_s14  ;;  %p1207_p3 = scmp.lt.u32.totalorder %s1203_s14, %s1382_s2 }
  0x27   :  { %p1209_p4 = pnand %p1207_p3, %p1204_p2 }
  0x29   :  { %1212 = shalt.err (!%p1209_p4)
}
  0x2a   :  { %s1213_s19 = scalar_lea.vmem %s39_s29, 144  ;;  %s1217_s20 = scalar_lea.vmem %s39_s29, 160 }
  0x2b   :  { %p1214_p5 = scmp.ne.s32.totalorder %s39_s29, %s1213_s19  ;;  %p1218_p6 = scmp.lt.s32.totalorder %s39_s29, %s39_s29 }
  0x2c   :  { %p1219_p7 = scmp.lt.s32.totalorder %s1217_s20, %s1213_s19 }
  0x2e   :  { %p1220_p8 = por %p1219_p7, %p1218_p6 }
  0x30   :  { %p1221_p9 = pnand %p1220_p8, %p1214_p5 }
  0x32   :  { %1224 = shalt.err (!%p1221_p9)
}
  0x33   :  { %s1258_s0 = smov 48   ;;  %s1259_s21 = smov 3  }
  0x34   :  { %44 = dma.hbm_to_vmem [thread:$0]  %s1382_s2, 144, %s39_s29, [#allocation6], %s1258_s0, %s1258_s0, %s1259_s21  }
  0x35   :  { %1247 = dma.done.wait [#allocation3], 128  }
  0x36   :  { %1248 = vsyncadd [#allocation3], 4294967168 }
  0x37   :  { %1249 = dma.done.wait [#allocation6], 9360  }
  0x38   :  { %1250 = vsyncadd [#allocation6], 4294957936  ;;  %v1260_v0 = vmov 0.0   ;;  %v1261_v1 = vmov 0   ;;  %vm1262_vm0 = vmmov 0   ;;  %v55_v25 = vld [vmem:[#allocation2] sm:$0xff]  ;;  %v91_v52 = vlaneseq }
  0x39   :  { %980 = vmatprep.subr.bf16.mxu1 %v1260_v0  ;;  %266 = vmatprep.mubr.bf16.mxu0 %v1261_v1  ;;  %v1051_v2 = vld [vmem:[#allocation5 + $0x4] ss:$12 sps:$4 sm:$0xff]   ;;  %v1053_v3 = vld [vmem:[#allocation5] ss:$12 sps:$4 sm:$0xff]   ;;  %v1054_v4 = vld [vmem:[#allocation5 + $0x1c] ss:$12 sps:$4 sm:$0xff]   ;;  %v89_v27 = vpack.c.bf16 %v55_v25, %v55_v25 }
  0x3a   :  { %996 = vmatprep.mubr.msk.bf16.mxu1 %vm1262_vm0, %v1260_v0  ;;  %234 = vmatprep.subr.bf16.mxu0 %v1051_v2  ;;  %v1056_v5 = vld [vmem:[#allocation5 + $0x8] ss:$12 sps:$4 sm:$0xff]   ;;  %v1057_v6 = vld [vmem:[#allocation5 + $0x18] ss:$12 sps:$4 sm:$0xff]   ;;  %v1060_v8 = vld [vmem:[#allocation5 + $0x20] ss:$12 sps:$4 sm:$0xff]  }
  0x3b   :  { %235 = vmatpush1.bf16.msra.mxu0 %v1053_v3  ;;  %v1058_v7 = vld [vmem:[#allocation5 + $0x34] ss:$12 sps:$4 sm:$0xff]   ;;  %981 = vmatpush3.bf16.msra.mxu1 %v1056_v5  ;;  %v1061_v9 = vld [vmem:[#allocation5 + $0x30] ss:$12 sps:$4 sm:$0xff]   ;;  %v1062_v10 = vld [vmem:[#allocation5 + $0x4c] ss:$12 sps:$4 sm:$0xff]  }
  0x3c   :  { %236 = vmatprep.subr.bf16.mxu0 %v1054_v4  ;;  %982 = vmatprep.subr.bf16.mxu1 %v1260_v0  ;;  %v1064_v11 = vld [vmem:[#allocation5 + $0x38] ss:$12 sps:$4 sm:$0xff]   ;;  %v1065_v12 = vld [vmem:[#allocation5 + $0x48] ss:$12 sps:$4 sm:$0xff]   ;;  %v1068_v14 = vld [vmem:[#allocation5 + $0x50] ss:$12 sps:$4 sm:$0xff]  }
  0x3d   :  { %v1066_v13 = vld [vmem:[#allocation5 + $0x64] ss:$12 sps:$4 sm:$0xff]   ;;  %v1069_v15 = vld [vmem:[#allocation5 + $0x60] ss:$12 sps:$4 sm:$0xff]   ;;  %v1070_v16 = vld [vmem:[#allocation5 + $0x7c] ss:$12 sps:$4 sm:$0xff]  }
  0x3e   :  { %v1072_v17 = vld [vmem:[#allocation5 + $0x68] ss:$12 sps:$4 sm:$0xff]   ;;  %v1073_v18 = vld [vmem:[#allocation5 + $0x78] ss:$12 sps:$4 sm:$0xff]   ;;  %v1076_v20 = vld [vmem:[#allocation5 + $0x80] ss:$12 sps:$4 sm:$0xff]  }
  0x3f   :  { %237 = vmatpush1.bf16.msra.mxu0 %v1057_v6  ;;  %983 = vmatpush3.bf16.msra.mxu1 %v1060_v8  ;;  %v1074_v19 = vld [vmem:[#allocation5 + $0x94] ss:$12 sps:$4 sm:$0xff]   ;;  %v1077_v21 = vld [vmem:[#allocation5 + $0x90] ss:$12 sps:$4 sm:$0xff]   ;;  %v1078_v22 = vld [vmem:[#allocation5 + $0xac] ss:$12 sps:$4 sm:$0xff]  }
  0x40   :  { %238 = vmatprep.subr.bf16.mxu0 %v1058_v7  ;;  %984 = vmatprep.subr.bf16.mxu1 %v1260_v0  ;;  %v1080_v23 = vld [vmem:[#allocation5 + $0x98] ss:$12 sps:$4 sm:$0xff]   ;;  %v1081_v24 = vld [vmem:[#allocation5 + $0xa8] ss:$12 sps:$4 sm:$0xff]   ;;  %v1082_v26 = vld [vmem:[#allocation5 + $0xb0] ss:$12 sps:$4 sm:$0xff]  }
  0x41   :  { %v1085_v28 = vld [vmem:[#allocation5 + $0xc4] ss:$12 sps:$4 sm:$0xff]   ;;  %v1083_v29 = vld [vmem:[#allocation5 + $0xc0] ss:$12 sps:$4 sm:$0xff]   ;;  %v1086_v30 = vld [vmem:[#allocation5 + $0xc8] ss:$12 sps:$4 sm:$0xff]  }
  0x42   :  { %v1089_v31 = vld [vmem:[#allocation5 + $0xdc] ss:$12 sps:$4 sm:$0xff]   ;;  %v1087_v32 = vld [vmem:[#allocation5 + $0xd8] ss:$12 sps:$4 sm:$0xff]   ;;  %v1090_v33 = vld [vmem:[#allocation5 + $0xe0] ss:$12 sps:$4 sm:$0xff]  }
  0x43   :  { %239 = vmatpush1.bf16.msra.mxu0 %v1061_v9  ;;  %985 = vmatpush3.bf16.msra.mxu1 %v1064_v11  ;;  %v1093_v34 = vld [vmem:[#allocation5 + $0xf4] ss:$12 sps:$4 sm:$0xff]   ;;  %v1091_v35 = vld [vmem:[#allocation5 + $0xf0] ss:$12 sps:$4 sm:$0xff]   ;;  %v1094_v36 = vld [vmem:[#allocation5 + $0xf8] ss:$12 sps:$4 sm:$0xff]  }
  0x44   :  { %240 = vmatprep.subr.bf16.mxu0 %v1062_v10  ;;  %986 = vmatprep.subr.bf16.mxu1 %v1260_v0  ;;  %v1097_v37 = vld [vmem:[#allocation5 + $0x10c] ss:$12 sps:$4 sm:$0xff]   ;;  %v1095_v38 = vld [vmem:[#allocation5 + $0x108] ss:$12 sps:$4 sm:$0xff]   ;;  %v1098_v39 = vld [vmem:[#allocation5 + $0x110] ss:$12 sps:$4 sm:$0xff]  }
  0x45   :  { %v1101_v40 = vld [vmem:[#allocation5 + $0x124] ss:$12 sps:$4 sm:$0xff]   ;;  %v1099_v41 = vld [vmem:[#allocation5 + $0x120] ss:$12 sps:$4 sm:$0xff]   ;;  %v1102_v42 = vld [vmem:[#allocation5 + $0x128] ss:$12 sps:$4 sm:$0xff]  }
  0x46   :  { %v1105_v43 = vld [vmem:[#allocation5 + $0x13c] ss:$12 sps:$4 sm:$0xff]   ;;  %v1103_v44 = vld [vmem:[#allocation5 + $0x138] ss:$12 sps:$4 sm:$0xff]   ;;  %v1106_v45 = vld [vmem:[#allocation5 + $0x140] ss:$12 sps:$4 sm:$0xff]  }
  0x47   :  { %241 = vmatpush1.bf16.msra.mxu0 %v1065_v12  ;;  %987 = vmatpush3.bf16.msra.mxu1 %v1068_v14  ;;  %v1109_v46 = vld [vmem:[#allocation5 + $0x154] ss:$12 sps:$4 sm:$0xff]   ;;  %v1107_v47 = vld [vmem:[#allocation5 + $0x150] ss:$12 sps:$4 sm:$0xff]   ;;  %v1110_v48 = vld [vmem:[#allocation5 + $0x158] ss:$12 sps:$4 sm:$0xff]  }
  0x48   :  { %242 = vmatprep.subr.bf16.mxu0 %v1066_v13  ;;  %988 = vmatprep.subr.bf16.mxu1 %v1260_v0  ;;  %v1113_v49 = vld [vmem:[#allocation5 + $0x16c] ss:$12 sps:$4 sm:$0xff]   ;;  %v1111_v50 = vld [vmem:[#allocation5 + $0x168] ss:$12 sps:$4 sm:$0xff]   ;;  %v1114_v51 = vld [vmem:[#allocation5 + $0x170] ss:$12 sps:$4 sm:$0xff]  }
  0x49   :  { %v92_v53 = vshrl.u32 %v91_v52, 7  ;;  %v88_v55 = vld [vmem:[#allocation7] sm:$0x7]  ;;  %s1263_s2 = smov [#allocation8]  }
  0x4a   :  { %v1122_v25 = vld [vmem:[#allocation5 + $0x1a0] ss:$12 sps:$4 sm:$0xff]   ;;  %s871_s24 = sshll.u32 %s1263_s2, 4  ;;  %s872_s24 = int_to_ptr.vmem [resolvable:$true] %s871_s24 }
  0x4b   :  { %243 = vmatpush1.bf16.msra.mxu0 %v1069_v15  ;;  %989 = vmatpush3.bf16.msra.mxu1 %v1072_v17  ;;  %v1343_v54 = vsub.s32 0, %v92_v53  ;;  %v1345_v56 = vsub.s32 1, %v92_v53  ;;  %v1347_v57 = vsub.s32 2, %v92_v53  ;;  %s1225_s25 = scalar_lea.vmem %s872_s24, 128  ;;  %p1230_p11 = scmp.lt.s32.totalorder %s872_s24, %s872_s24 }
  0x4c   :  { %244 = vmatprep.subr.bf16.mxu0 %v1070_v16  ;;  %990 = vmatprep.subr.bf16.mxu1 %v1260_v0  ;;  %p1226_p10 = scmp.ne.s32.totalorder %s872_s24, %s1225_s25  ;;  %p1231_p12 = scmp.lt.s32.totalorder %s1225_s25, %s1225_s25 }
  0x4d   :  { %v94_v58 = vrot.slane %v88_v55, %v1343_v54  ;;  %v98_v59 = vrot.slane %v88_v55, %v1345_v56  ;;  %v102_v60 = vrot.slane %v88_v55, %v1347_v57 }
  0x4e   :  { %p1232_p13 = por %p1231_p12, %p1230_p11 }
  0x4f   :  { %245 = vmatpush1.bf16.msra.mxu0 %v1073_v18  ;;  %991 = vmatpush3.bf16.msra.mxu1 %v1076_v20  ;;  %v1117_v20 = vld [vmem:[#allocation5 + $0x184] ss:$12 sps:$4 sm:$0xff]  }
  0x50   :  { %246 = vmatprep.subr.bf16.mxu0 %v1074_v19  ;;  %992 = vmatprep.subr.bf16.mxu1 %v1260_v0  ;;  %p1233_p0 = pnand %p1232_p13, %p1226_p10 }
  0x53   :  { %247 = vmatpush1.bf16.msra.mxu0 %v1077_v21  ;;  %993 = vmatpush3.bf16.msra.mxu1 %v1080_v23  ;;  %v1115_v21 = vld [vmem:[#allocation5 + $0x180] ss:$12 sps:$4 sm:$0xff]   ;;  %v1121_v23 = vld [vmem:[#allocation5 + $0x19c] ss:$12 sps:$4 sm:$0xff]  }
  0x54   :  { %248 = vmatprep.subr.bf16.mxu0 %v1078_v22  ;;  %994 = vmatprep.subr.bf16.mxu1 %v1260_v0  ;;  %v1118_v22 = vld [vmem:[#allocation5 + $0x188] ss:$12 sps:$4 sm:$0xff]  }
  0x57   :  { %249 = vmatpush1.bf16.msra.mxu0 %v1081_v24  ;;  %995 = vmatpush3.bf16.msra.mxu1 %v1082_v26  ;;  %v1119_v24 = vld [vmem:[#allocation5 + $0x198] ss:$12 sps:$4 sm:$0xff]   ;;  %v1125_v26 = vld [vmem:[#allocation5 + $0x1b4] ss:$12 sps:$4 sm:$0xff]  }
  0x58   :  { %1000 = vmatprep.subr.bf16.mxu1 %v1260_v0  ;;  %504 = vmatprep.subr.bf16.mxu0 %v1085_v28  ;;  %v1129_v28 = vld [vmem:[#allocation5 + $0x1cc] ss:$12 sps:$4 sm:$0xff]  }
  0x5a   :  { %267 = vmatmul.mubr.bf16.vlgmr.msra.gmra.mrb[0].mxu0 %v89_v27  ;;  %997 = vmatmul.mubr.bf16.vlgmr.msra.gmra.mrb[0].mxu1 %v89_v27  ;;  %v1126_v27 = vld [vmem:[#allocation5 + $0x1b8] ss:$12 sps:$4 sm:$0xff]  }
  0x5b   :  { %536 = vmatprep.mubr.bf16.mxu0 %v1261_v1  ;;  %1016 = vmatprep.mubr.msk.bf16.mxu1 %vm1262_vm0, %v1260_v0 }
  0x5c   :  { %505 = vmatpush1.bf16.msra.mxu0 %v1083_v29  ;;  %1001 = vmatpush3.bf16.msra.mxu1 %v1086_v30  ;;  %v1127_v29 = vld [vmem:[#allocation5 + $0x1c8] ss:$12 sps:$4 sm:$0xff]   ;;  %v1130_v30 = vld [vmem:[#allocation5 + $0x1d0] ss:$12 sps:$4 sm:$0xff]  }
  0x5d   :  { %1002 = vmatprep.subr.bf16.mxu1 %v1260_v0  ;;  %506 = vmatprep.subr.bf16.mxu0 %v1089_v31  ;;  %v1133_v31 = vld [vmem:[#allocation5 + $0x1e4] ss:$12 sps:$4 sm:$0xff]  }
  0x60   :  { %507 = vmatpush1.bf16.msra.mxu0 %v1087_v32  ;;  %1003 = vmatpush3.bf16.msra.mxu1 %v1090_v33  ;;  %v1131_v32 = vld [vmem:[#allocation5 + $0x1e0] ss:$12 sps:$4 sm:$0xff]   ;;  %v1134_v33 = vld [vmem:[#allocation5 + $0x1e8] ss:$12 sps:$4 sm:$0xff]  }
  0x61   :  { %1004 = vmatprep.subr.bf16.mxu1 %v1260_v0  ;;  %508 = vmatprep.subr.bf16.mxu0 %v1093_v34  ;;  %v1137_v34 = vld [vmem:[#allocation5 + $0x1fc] ss:$12 sps:$4 sm:$0xff]  }
  0x64   :  { %509 = vmatpush1.bf16.msra.mxu0 %v1091_v35  ;;  %1005 = vmatpush3.bf16.msra.mxu1 %v1094_v36  ;;  %v1135_v35 = vld [vmem:[#allocation5 + $0x1f8] ss:$12 sps:$4 sm:$0xff]   ;;  %v1138_v36 = vld [vmem:[#allocation5 + $0x200] ss:$12 sps:$4 sm:$0xff]  }
  0x65   :  { %1006 = vmatprep.subr.bf16.mxu1 %v1260_v0  ;;  %510 = vmatprep.subr.bf16.mxu0 %v1097_v37  ;;  %v1141_v37 = vld [vmem:[#allocation5 + $0x214] ss:$12 sps:$4 sm:$0xff]  }
  0x68   :  { %511 = vmatpush1.bf16.msra.mxu0 %v1095_v38  ;;  %1007 = vmatpush3.bf16.msra.mxu1 %v1098_v39  ;;  %v1139_v38 = vld [vmem:[#allocation5 + $0x210] ss:$12 sps:$4 sm:$0xff]   ;;  %v1142_v39 = vld [vmem:[#allocation5 + $0x218] ss:$12 sps:$4 sm:$0xff]  }
  0x69   :  { %1008 = vmatprep.subr.bf16.mxu1 %v1260_v0  ;;  %512 = vmatprep.subr.bf16.mxu0 %v1101_v40  ;;  %v1145_v40 = vld [vmem:[#allocation5 + $0x22c] ss:$12 sps:$4 sm:$0xff]  }
  0x6c   :  { %513 = vmatpush1.bf16.msra.mxu0 %v1099_v41  ;;  %1009 = vmatpush3.bf16.msra.mxu1 %v1102_v42  ;;  %v1143_v41 = vld [vmem:[#allocation5 + $0x228] ss:$12 sps:$4 sm:$0xff]   ;;  %v1146_v42 = vld [vmem:[#allocation5 + $0x230] ss:$12 sps:$4 sm:$0xff]  }
  0x6d   :  { %1010 = vmatprep.subr.bf16.mxu1 %v1260_v0  ;;  %514 = vmatprep.subr.bf16.mxu0 %v1105_v43  ;;  %v358_v43 = vld [vmem:[#allocation7 + $0x3] sm:$0x7] }
  0x70   :  { %515 = vmatpush1.bf16.msra.mxu0 %v1103_v44  ;;  %1011 = vmatpush3.bf16.msra.mxu1 %v1106_v45  ;;  %v364_v44 = vrot.slane %v358_v43, %v1343_v54  ;;  %v368_v45 = vrot.slane %v358_v43, %v1345_v56 }
  0x71   :  { %1012 = vmatprep.subr.bf16.mxu1 %v1260_v0  ;;  %516 = vmatprep.subr.bf16.mxu0 %v1109_v46 }
  0x74   :  { %517 = vmatpush1.bf16.msra.mxu0 %v1107_v47  ;;  %1013 = vmatpush3.bf16.msra.mxu1 %v1110_v48  ;;  %v372_v47 = vrot.slane %v358_v43, %v1347_v57 }
  0x75   :  { %1014 = vmatprep.subr.bf16.mxu1 %v1260_v0  ;;  %518 = vmatprep.subr.bf16.mxu0 %v1113_v49 }
  0x78   :  { %519 = vmatpush1.bf16.msra.mxu0 %v1111_v50  ;;  %1015 = vmatpush3.bf16.msra.mxu1 %v1114_v51 }
  0x79   :  { %1020 = vmatprep.subr.bf16.mxu1 %v1260_v0  ;;  %774 = vmatprep.subr.bf16.mxu0 %v1117_v20 }
 0x12d   :  { %v268_v61 = vpop.f32.mrb[0].mxu0  ;;  %v309_v4 = vpop.f32.mrb[0].mxu1 }
 0x12e   :  { %v269_v62 = vadd.f32 %v268_v61, %v94_v58  ;;  %v270_v63 = vpop.f32.mrb[1].mxu0  ;;  %v310_v7 = vadd.f32 %v309_v4, %v102_v60  ;;  %v998_v8 = vpop.f32.mrb[1].mxu1 }
 0x12f   :  { %v271_v2 = vadd.f32 %v270_v63, %v98_v59  ;;  %v272_v3 = vpop.f32.mrb[2].mxu0  ;;  %v312_v10 = vpop.f32.mrb[2].mxu1  ;;  %v628_v8 = vld [vmem:[#allocation7 + $0x6] sm:$0x7] }
 0x130   :  { %v316_v5 = vsub.f32 0.0, %v269_v62  ;;  %v273_v6 = vpop.f32.mrb[3].mxu0  ;;  %v999_v12 = vpop.f32.mrb[3].mxu1  ;;  %v638_v10 = vrot.slane %v628_v8, %v1345_v56 }
 0x131   :  { %v315_v9 = vmax.f32 %v271_v2, 0.0  ;;  %v642_v12 = vrot.slane %v628_v8, %v1347_v57 }
 0x132   :  { %v317_v11 = vmul.f32 1.442695, %v316_v5 }
 0x133   :  { %v321_v13 = vsub.f32 %v315_v9, %v310_v7  ;;  %v634_v9 = vrot.slane %v628_v8, %v1343_v54 }
 0x134   :  { %1147 = vpow2.f32 %v317_v11 }
 0x13e   :  { %v1148_v14 = vpop.eup %1147 }
 0x13f   :  { %v319_v15 = vadd.f32 1.0, %v1148_v14 }
 0x141   :  { %1149 = vrcp.f32 %v319_v15 }
 0x14b   :  { %v1150_v16 = vpop.eup %1149 }
 0x14c   :  { %v322_v17 = vmul.f32 %v1150_v16, %v321_v13 }
 0x14e   :  { %v323_v18 = vadd.f32 %v322_v17, %v310_v7 }
 0x150   :  { %v359_v19 = vpack.c.bf16 %v323_v18, %v323_v18 }
 0x152   :  { %537 = vmatmul.mubr.bf16.vlgmr.msra.gmra.mrb[4].mxu0 %v359_v19  ;;  %1017 = vmatmul.mubr.bf16.vlgmr.msra.gmra.mrb[4].mxu1 %v359_v19 }
 0x153   :  { %806 = vmatprep.mubr.bf16.mxu0 %v1261_v1  ;;  %1036 = vmatprep.mubr.msk.bf16.mxu1 %vm1262_vm0, %v1260_v0  ;;  %v1123_v1 = vld [vmem:[#allocation5 + $0x1b0] ss:$12 sps:$4 sm:$0xff]  }
 0x154   :  { %775 = vmatpush1.bf16.msra.mxu0 %v1115_v21  ;;  %1021 = vmatpush3.bf16.msra.mxu1 %v1118_v22 }
 0x155   :  { %1022 = vmatprep.subr.bf16.mxu1 %v1260_v0  ;;  %776 = vmatprep.subr.bf16.mxu0 %v1121_v23 }
 0x158   :  { %777 = vmatpush1.bf16.msra.mxu0 %v1119_v24  ;;  %1023 = vmatpush3.bf16.msra.mxu1 %v1122_v25 }
 0x159   :  { %1024 = vmatprep.subr.bf16.mxu1 %v1260_v0  ;;  %778 = vmatprep.subr.bf16.mxu0 %v1125_v26 }
 0x15c   :  { %779 = vmatpush1.bf16.msra.mxu0 %v1123_v1  ;;  %1025 = vmatpush3.bf16.msra.mxu1 %v1126_v27 }
 0x15d   :  { %1026 = vmatprep.subr.bf16.mxu1 %v1260_v0  ;;  %780 = vmatprep.subr.bf16.mxu0 %v1129_v28 }
 0x160   :  { %781 = vmatpush1.bf16.msra.mxu0 %v1127_v29  ;;  %1027 = vmatpush3.bf16.msra.mxu1 %v1130_v30 }
 0x161   :  { %1028 = vmatprep.subr.bf16.mxu1 %v1260_v0  ;;  %782 = vmatprep.subr.bf16.mxu0 %v1133_v31 }
 0x164   :  { %783 = vmatpush1.bf16.msra.mxu0 %v1131_v32  ;;  %1029 = vmatpush3.bf16.msra.mxu1 %v1134_v33 }
 0x165   :  { %1030 = vmatprep.subr.bf16.mxu1 %v1260_v0  ;;  %784 = vmatprep.subr.bf16.mxu0 %v1137_v34 }
 0x168   :  { %785 = vmatpush1.bf16.msra.mxu0 %v1135_v35  ;;  %1031 = vmatpush3.bf16.msra.mxu1 %v1138_v36 }
 0x169   :  { %1032 = vmatprep.subr.bf16.mxu1 %v1260_v0  ;;  %786 = vmatprep.subr.bf16.mxu0 %v1141_v37 }
 0x16c   :  { %787 = vmatpush1.bf16.msra.mxu0 %v1139_v38  ;;  %1033 = vmatpush3.bf16.msra.mxu1 %v1142_v39 }
 0x16d   :  { %1034 = vmatprep.subr.bf16.mxu1 %v1260_v0  ;;  %788 = vmatprep.subr.bf16.mxu0 %v1145_v40 }
 0x170   :  { %789 = vmatpush1.bf16.msra.mxu0 %v1143_v41  ;;  %1035 = vmatpush3.bf16.msra.mxu1 %v1146_v42 }
 0x225   :  { %v538_v46 = vpop.f32.mrb[4].mxu0  ;;  %v579_v48 = vpop.f32.mrb[4].mxu1 }
 0x226   :  { %v539_v49 = vadd.f32 %v538_v46, %v364_v44  ;;  %v540_v50 = vpop.f32.mrb[5].mxu0  ;;  %v1018_v51 = vpop.f32.mrb[5].mxu1  ;;  %v580_v60 = vadd.f32 %v579_v48, %v372_v47 }
 0x227   :  { %v541_v52 = vadd.f32 %v540_v50, %v368_v45  ;;  %v542_v53 = vpop.f32.mrb[6].mxu0  ;;  %v582_v0 = vpop.f32.mrb[6].mxu1 }
 0x228   :  { %v586_v55 = vsub.f32 0.0, %v539_v49  ;;  %v543_v58 = vpop.f32.mrb[7].mxu0  ;;  %v1019_v59 = vpop.f32.mrb[7].mxu1 }
 0x229   :  { %v585_v61 = vmax.f32 %v541_v52, 0.0 }
 0x22a   :  { %v587_v62 = vmul.f32 1.442695, %v586_v55 }
 0x22b   :  { %v591_v63 = vsub.f32 %v585_v61, %v580_v60 }
 0x22c   :  { %1151 = vpow2.f32 %v587_v62 }
 0x236   :  { %v1152_v2 = vpop.eup %1151 }
 0x237   :  { %v589_v3 = vadd.f32 1.0, %v1152_v2 }
 0x239   :  { %1153 = vrcp.f32 %v589_v3 }
 0x243   :  { %v1154_v4 = vpop.eup %1153 }
 0x244   :  { %v592_v5 = vmul.f32 %v1154_v4, %v591_v63 }
 0x246   :  { %v593_v6 = vadd.f32 %v592_v5, %v580_v60 }
 0x248   :  { %v629_v7 = vpack.c.bf16 %v593_v6, %v593_v6 }
 0x24a   :  { %807 = vmatmul.mubr.bf16.vlgmr.msra.gmra.mrb[8].mxu0 %v629_v7  ;;  %1037 = vmatmul.mubr.bf16.vlgmr.msra.gmra.mrb[8].mxu1 %v629_v7 }
 0x31d   :  { %v808_v11 = vpop.f32.mrb[8].mxu0  ;;  %v849_v13 = vpop.f32.mrb[8].mxu1 }
 0x31e   :  { %v809_v14 = vadd.f32 %v808_v11, %v634_v9  ;;  %v810_v15 = vpop.f32.mrb[9].mxu0  ;;  %v1038_v16 = vpop.f32.mrb[9].mxu1  ;;  %v850_v23 = vadd.f32 %v849_v13, %v642_v12 }
 0x31f   :  { %v811_v17 = vadd.f32 %v810_v15, %v638_v10  ;;  %v812_v18 = vpop.f32.mrb[10].mxu0  ;;  %v852_v19 = vpop.f32.mrb[10].mxu1 }
 0x320   :  { %v856_v20 = vsub.f32 0.0, %v809_v14  ;;  %v813_v21 = vpop.f32.mrb[11].mxu0  ;;  %v1039_v22 = vpop.f32.mrb[11].mxu1 }
 0x321   :  { %v855_v24 = vmax.f32 %v811_v17, 0.0 }
 0x322   :  { %v857_v25 = vmul.f32 1.442695, %v856_v20 }
 0x323   :  { %v861_v26 = vsub.f32 %v855_v24, %v850_v23 }
 0x324   :  { %1155 = vpow2.f32 %v857_v25 }
 0x32e   :  { %v1156_v54 = vpop.eup %1155 }
 0x32f   :  { %v859_v56 = vadd.f32 1.0, %v1156_v54 }
 0x331   :  { %1157 = vrcp.f32 %v859_v56 }
 0x33b   :  { %v1158_v1 = vpop.eup %1157 }
 0x33c   :  { %v862_v57 = vmul.f32 %v1158_v1, %v861_v26 }
 0x33e   :  { %v863_v27 = vadd.f32 %v862_v57, %v850_v23 }
 0x340   :  { %864 = vst [vmem:[#allocation8] sm:$0xff] %v863_v27 }
 0x341   :  { %1236 = shalt.err (!%p1233_p0)
}
 0x342   :  { %s1237_s28 = scalar_lea.hbm %s1383_s3, 128 }
 0x343   :  { %p1238_p1 = scmp.ne.s32.totalorder %s1383_s3, %s1237_s28  ;;  %p1241_p2 = scmp.lt.u32.totalorder %s1237_s28, %s1383_s3 }
 0x345   :  { %p1243_p3 = pnand %p1241_p2, %p1238_p1 }
 0x347   :  { %1246 = shalt.err (!%p1243_p3)
}
 0x348   :  { %874 = dma.vmem_to_hbm [thread:$0]  %s872_s24, 128, %s1383_s3, [#allocation4]  }
 0x349   :  { %1251 = dma.done.wait [#allocation4], 128  }
 0x34a   :  { %1252 = vsyncadd [#allocation4], 4294967168 }
 0x34b   :  { %878 = vsyncpa [#allocation3], 1 }
 0x34c   :  { %879 = vsyncpa [#allocation6], 1 }
 0x34d   :  { %880 = vsyncpa [#allocation4], 1 }

</bundles_post_ra>
